<compile_context>
chip_gen: v7x
topology: tpu7x:2x2x1
jax: 0.10.0
libtpu: 0.0.40
codegen_flags: <defaults>
</compile_context>

<pallas_src>
import functools

import jax
import jax.numpy as jnp
from jax.experimental import pallas as pl
from jax.experimental.pallas import tpu as pltpu

LANE = 128


def _round_up(x, m):
    return (x + m - 1) // m * m


# --------------------------------------------------------------------------------------------
# Kernel
# --------------------------------------------------------------------------------------------
def _cnn_kernel(x_ref, mask_ref,
                w_in_ref, b_in_ref,
                w_conv_ref, b_conv_ref,
                w_hid_ref, b_hid_ref,
                w_out_ref, b_out_ref,
                out_ref, *, batch, seq_len, kernel_size):
    """One batch-tile of the fused forward. Activations are (batch*seq_len, Hp), lane-dense."""
    rows = batch * seq_len
    h = w_in_ref.shape[1]
    mask = mask_ref[...]                                           # (rows, 1) f32, 1=real 0=pad

    # 1) word-vector layer (linear_input) + ReLU + sequence mask.
    a1 = jnp.dot(x_ref[...], w_in_ref[...],
                 preferred_element_type=jnp.float32) + b_in_ref[...]
    z = jnp.maximum(a1, 0.0) * mask                                # (rows, h) f32

    # 2) Conv1d(h, h, k, padding=(k-1)//2) as ONE im2col MXU matmul. Time-shifted copies come
    #    from XLU sublane rolls on the flattened row axis; rows that wrap across a sequence
    #    boundary are zeroed -- these are exactly the conv's zero pads. Each tap is cast to
    #    bf16 BEFORE the lane concat to halve the concat bytes / VMEM footprint.
    t = jax.lax.broadcasted_iota(jnp.int32, (rows, 1), 0) % seq_len   # position within sequence
    pad = (kernel_size - 1) // 2
    taps = []
    for j in range(kernel_size):                                   # static, tiny (k=3)
        off = j - pad                                              # temporal offset of this tap
        if off == 0:
            s = z
        elif off < 0:                                              # z[b, t+off], off < 0
            s = jnp.where(t >= -off, pltpu.roll(z, shift=-off, axis=0), 0.0)
        else:                                                      # z[b, t+off], off > 0
            s = jnp.where(t < seq_len - off,
                          pltpu.roll(z, shift=rows - off, axis=0), 0.0)
        taps.append(s.astype(jnp.bfloat16))
    col = jnp.concatenate(taps, axis=1)                            # (rows, k*h) bf16, lane-dense

    a2 = jnp.dot(col, w_conv_ref[...],
                 preferred_element_type=jnp.float32) + b_conv_ref[...]
    c1 = jnp.maximum(a2, 0.0) * mask                               # (rows, h) f32

    # 3) max-pool over time (pool='max'); masked positions are exactly 0 as in the module,
    #    and c1 >= 0, so padded time steps never win the max.
    pooled = jnp.max(c1.reshape(batch, seq_len, h), axis=1)        # (batch, h) f32

    # dropout is identity at inference time.
    # 4) fc_hidden + ReLU, then fc_output into a lane-dense zero-padded logits slab.
    hid = jnp.dot(pooled.astype(jnp.bfloat16), w_hid_ref[...],
                  preferred_element_type=jnp.float32) + b_hid_ref[...]
    hid = jnp.maximum(hid, 0.0)
    logits = jnp.dot(hid.astype(jnp.bfloat16), w_out_ref[...],
                     preferred_element_type=jnp.float32) + b_out_ref[...]
    out_ref[...] = logits                                          # (batch, 128) single dense store


# --------------------------------------------------------------------------------------------
# One-time weight preparation (hoisted out of the per-call path)
# --------------------------------------------------------------------------------------------
def prepare_params(params):
    """Pad/transpose/pack/cast all weights once. Returns (prepped_arrays, static_meta)."""
    word_mat = params['word_mat']
    V, d = word_mat.shape
    h = params['conv_b'].shape[0]
    k = params['conv_w'].shape[2]
    nc = params['fc_out_b'].shape[0]
    assert nc <= LANE, "num_classes must fit one lane-dense slab"
    Dp = _round_up(d, LANE)
    Hp = _round_up(h, LANE)
    NCp = LANE

    wm = jnp.zeros((V, Dp), jnp.float32).at[:, :d].set(word_mat).astype(jnp.bfloat16)

    w_in = jnp.zeros((Dp, Hp), jnp.float32).at[:d, :h].set(params['lin_in_w'].T)
    b_in = jnp.zeros((1, Hp), jnp.float32).at[0, :h].set(params['lin_in_b'])

    # Pack conv taps along K: rows [j*Hp:(j+1)*Hp] = W[:, :, j].T (PyTorch layout (out, in, k)),
    # matching the im2col column order [z[t-pad], ..., z[t], ..., z[t+pad]].
    taps = []
    for j in range(k):
        taps.append(jnp.zeros((Hp, Hp), jnp.float32).at[:h, :h].set(params['conv_w'][:, :, j].T))
    w_conv = jnp.concatenate(taps, axis=0)                          # (k*Hp, Hp)
    b_conv = jnp.zeros((1, Hp), jnp.float32).at[0, :h].set(params['conv_b'])

    w_hid = jnp.zeros((Hp, Hp), jnp.float32).at[:h, :h].set(params['fc_hid_w'].T)
    b_hid = jnp.zeros((1, Hp), jnp.float32).at[0, :h].set(params['fc_hid_b'])

    w_out = jnp.zeros((Hp, NCp), jnp.float32).at[:h, :nc].set(params['fc_out_w'].T)
    b_out = jnp.zeros((1, NCp), jnp.float32).at[0, :nc].set(params['fc_out_b'])

    prepped = dict(
        word_mat=wm,
        w_in=w_in.astype(jnp.bfloat16), b_in=b_in,
        w_conv=w_conv.astype(jnp.bfloat16), b_conv=b_conv,
        w_hid=w_hid.astype(jnp.bfloat16), b_hid=b_hid,
        w_out=w_out.astype(jnp.bfloat16), b_out=b_out,
    )
    meta = dict(kernel_size=int(k), num_classes=int(nc))
    return prepped, meta


# --------------------------------------------------------------------------------------------
# Forward wrapper
# --------------------------------------------------------------------------------------------
def cnn_forward(x_idx, mask, prepped, *, num_classes, kernel_size, batch_tile=8):
    """CNNModel.forward (eval, pool='max', default config). Returns (B, num_classes) f32."""
    wm = prepped['word_mat']
    Dp = wm.shape[1]
    Hp = prepped['b_in'].shape[1]
    NCp = prepped['b_out'].shape[1]
    B, n = x_idx.shape
    n_pad = _round_up(n, 8)                       # sublane-aligned pooling reshape
    B_pad = _round_up(B, batch_tile)              # dense output store + even grid tiles

    # ---- glue (plain JAX): layout padding, embedding gather ----
    x_idx_p = jnp.zeros((B_pad, n_pad), x_idx.dtype).at[:B, :n].set(x_idx)
    mask_p = jnp.zeros((B_pad, n_pad), jnp.float32).at[:B, :n].set(mask.astype(jnp.float32))
    x_vecs = jnp.take(wm, x_idx_p.reshape(-1), axis=0)             # (B_pad*n_pad, Dp) bf16
    mask_flat = mask_p.reshape(B_pad * n_pad, 1)

    weight_names = ('w_in', 'b_in', 'w_conv', 'b_conv', 'w_hid', 'b_hid', 'w_out', 'b_out')
    weights = [prepped[name] for name in weight_names]
    inputs = [x_vecs, mask_flat] + weights

    rows = B_pad * n_pad
    flops = 2 * rows * (Dp * Hp + kernel_size * Hp * Hp) + 2 * B_pad * (Hp * Hp + Hp * NCp)
    bytes_accessed = sum(int(a.size) * a.dtype.itemsize for a in inputs) + B_pad * NCp * 4

    tile_rows = batch_tile * n_pad

    def w_spec(a):
        return pl.BlockSpec(a.shape, lambda i: (0, 0))             # VMEM-resident across tiles

    out = pl.pallas_call(
        functools.partial(_cnn_kernel, batch=batch_tile, seq_len=n_pad,
                          kernel_size=kernel_size),
        out_shape=jax.ShapeDtypeStruct((B_pad, NCp), jnp.float32),
        grid=(B_pad // batch_tile,),
        in_specs=[pl.BlockSpec((tile_rows, Dp), lambda i: (i, 0)),
                  pl.BlockSpec((tile_rows, 1), lambda i: (i, 0))]
                 + [w_spec(a) for a in weights],
        out_specs=pl.BlockSpec((batch_tile, NCp), lambda i: (i, 0)),
        compiler_params=pltpu.CompilerParams(dimension_semantics=("parallel",)),
        cost_estimate=pl.CostEstimate(flops=int(flops), transcendentals=0,
                                      bytes_accessed=int(bytes_accessed)),
    )(*inputs)
    return out[:B, :num_classes]


# --------------------------------------------------------------------------------------------
# Pure-JAX reference (mirrors module semantics; compute_dtype mirrors bf16 MXU operand rounding)
# --------------------------------------------------------------------------------------------
def cnn_reference(x_idx, mask, params, compute_dtype=jnp.float32):
    cd = compute_dtype
    f32 = jnp.float32

    def mm(a, b):
        return jnp.dot(a.astype(cd).astype(f32), b.astype(cd).astype(f32),
                       precision=jax.lax.Precision.HIGHEST)

    B, n = x_idx.shape
    d = params['word_mat'].shape[1]
    h = params['conv_b'].shape[0]
    k = params['conv_w'].shape[2]
    maskf = mask.astype(f32)

    x_vecs = jnp.take(params['word_mat'], x_idx, axis=0)                       # (B, n, d)
    a1 = mm(x_vecs.reshape(B * n, d), params['lin_in_w'].T) + params['lin_in_b']
    z = jnp.maximum(a1, 0.0).reshape(B, n, h) * maskf[:, :, None]

    pad = (k - 1) // 2
    zp = jnp.pad(z, ((0, 0), (pad, pad), (0, 0)))
    y = jnp.zeros((B * n, h), f32)
    for j in range(k):
        y = y + mm(zp[:, j:j + n, :].reshape(B * n, h), params['conv_w'][:, :, j].T)
    c1 = jnp.maximum(y + params['conv_b'], 0.0).reshape(B, n, h) * maskf[:, :, None]
    pooled = jnp.max(c1, axis=1)                                               # (B, h)

    hid = jnp.maximum(mm(pooled, params['fc_hid_w'].T) + params['fc_hid_b'], 0.0)
    return mm(hid, params['fc_out_w'].T) + params['fc_out_b']


if __name__ == "__main__":
    # batch, seq, word_vec_size, hidden_size, vocab, num_classes, kernel_size
    B, n, d, h, V, nc, k = 2, 16, 32, 32, 50, 2, 3

    key = jax.random.PRNGKey(0)
    ks = jax.random.split(key, 8)
    params = {
        'word_mat': jax.random.normal(ks[0], (V, d), jnp.float32) * 0.5,
        'lin_in_w': jax.random.normal(ks[1], (h, d), jnp.float32) * 0.2,   # Linear (out, in)
        'lin_in_b': jnp.full((h,), 0.1, jnp.float32),
        'conv_w': jax.random.normal(ks[2], (h, h, k), jnp.float32) * 0.2,  # Conv1d (out, in, k)
        'conv_b': jnp.full((h,), 0.1, jnp.float32),
        'fc_hid_w': jax.random.normal(ks[3], (h, h), jnp.float32) * 0.2,
        'fc_hid_b': jnp.full((h,), 0.1, jnp.float32),
        'fc_out_w': jax.random.normal(ks[4], (nc, h), jnp.float32) * 0.2,
        'fc_out_b': jnp.full((nc,), 0.1, jnp.float32),
    }

    x_idx = jax.random.randint(ks[5], (B, n), 0, V, dtype=jnp.int32)
    lengths = jnp.array([n, 10], jnp.int32)
    mask = (jnp.arange(n)[None, :] < lengths[:, None]).astype(jnp.float32)

    # One-time weight prep (hoisted out of the per-call path).
    prepped, meta = prepare_params(params)
    fwd = jax.jit(lambda xi, m: cnn_forward(xi, m, prepped,
                                            num_classes=meta['num_classes'],
                                            kernel_size=meta['kernel_size'],
                                            batch_tile=8))

    out = jax.block_until_ready(fwd(x_idx, mask))
    assert out.shape == (B, nc)

    # Tight check vs a reference with the same bf16 operand rounding as the kernel's MXU inputs.
    ref_bf16 = cnn_reference(x_idx, mask, params, compute_dtype=jnp.bfloat16)
    assert jnp.allclose(out, ref_bf16, atol=5e-3, rtol=5e-3), (out, ref_bf16)
    # Loose check vs exact f32 module semantics (tolerance covers bf16 operand rounding).
    ref_f32 = cnn_reference(x_idx, mask, params, compute_dtype=jnp.float32)
    assert jnp.allclose(out, ref_f32, atol=1.5e-1, rtol=1e-1), (out, ref_f32)

    print("KERNEL_OK")
</pallas_src>

<mosaic_0001>
module attributes {stable_mosaic.version = 11 : i64} {
  func.func @_cnn_kernel(%arg0: i32, %arg1: memref<128x128xbf16, #tpu.memory_space<vmem>>, %arg2: memref<128x1xf32, #tpu.memory_space<vmem>>, %arg3: memref<128x128xbf16, #tpu.memory_space<vmem>>, %arg4: memref<1x128xf32, #tpu.memory_space<vmem>>, %arg5: memref<384x128xbf16, #tpu.memory_space<vmem>>, %arg6: memref<1x128xf32, #tpu.memory_space<vmem>>, %arg7: memref<128x128xbf16, #tpu.memory_space<vmem>>, %arg8: memref<1x128xf32, #tpu.memory_space<vmem>>, %arg9: memref<128x128xbf16, #tpu.memory_space<vmem>>, %arg10: memref<1x128xf32, #tpu.memory_space<vmem>>, %arg11: memref<8x128xf32, #tpu.memory_space<vmem>>) attributes {dimension_semantics = [#tpu.dimension_semantics<parallel>], iteration_bounds = array<i64: 1>, scalar_prefetch = 0 : i64, scratch_operands = 0 : i64, tpu.core_type = #tpu.core_type<tc>, window_params = [{transform_indices = @transform_0, window_bounds = array<i64: 128, 128>}, {transform_indices = @transform_1, window_bounds = array<i64: 128, 1>}, {pipeline_mode = #tpu.pipeline_mode<synchronous>, transform_indices = @transform_2, window_bounds = array<i64: 128, 128>}, {pipeline_mode = #tpu.pipeline_mode<synchronous>, transform_indices = @transform_3, window_bounds = array<i64: 1, 128>}, {pipeline_mode = #tpu.pipeline_mode<synchronous>, transform_indices = @transform_4, window_bounds = array<i64: 384, 128>}, {pipeline_mode = #tpu.pipeline_mode<synchronous>, transform_indices = @transform_5, window_bounds = array<i64: 1, 128>}, {pipeline_mode = #tpu.pipeline_mode<synchronous>, transform_indices = @transform_6, window_bounds = array<i64: 128, 128>}, {pipeline_mode = #tpu.pipeline_mode<synchronous>, transform_indices = @transform_7, window_bounds = array<i64: 1, 128>}, {pipeline_mode = #tpu.pipeline_mode<synchronous>, transform_indices = @transform_8, window_bounds = array<i64: 128, 128>}, {pipeline_mode = #tpu.pipeline_mode<synchronous>, transform_indices = @transform_9, window_bounds = array<i64: 1, 128>}, {transform_indices = @transform_10, window_bounds = array<i64: 8, 128>}]} {
    %c0 = arith.constant 0 : index
    %c0_0 = arith.constant 0 : index
    %0 = vector.load %arg2[%c0, %c0_0] : memref<128x1xf32, #tpu.memory_space<vmem>>, vector<128x1xf32>
    %c0_1 = arith.constant 0 : index
    %c0_2 = arith.constant 0 : index
    %1 = vector.load %arg1[%c0_1, %c0_2] : memref<128x128xbf16, #tpu.memory_space<vmem>>, vector<128x128xbf16>
    %c0_3 = arith.constant 0 : index
    %c0_4 = arith.constant 0 : index
    %2 = vector.load %arg3[%c0_3, %c0_4] : memref<128x128xbf16, #tpu.memory_space<vmem>>, vector<128x128xbf16>
    %cst = arith.constant dense<0.000000e+00> : vector<128x128xf32>
    %3 = tpu.matmul %1, %2, %cst {dimension_numbers = #tpu.dot_dimension_numbers<[1], [0], [0], [1], [0, 0, 1, 1], [], []>} : vector<128x128xbf16>, vector<128x128xbf16>, vector<128x128xf32> -> vector<128x128xf32>
    %c0_5 = arith.constant 0 : index
    %c0_6 = arith.constant 0 : index
    %4 = vector.load %arg4[%c0_5, %c0_6] : memref<1x128xf32, #tpu.memory_space<vmem>>, vector<1x128xf32>
    %5 = vector.broadcast %4 : vector<1x128xf32> to vector<128x128xf32>
    %6 = arith.addf %3, %5 : vector<128x128xf32>
    %cst_7 = arith.constant 0.000000e+00 : f32
    %7 = vector.broadcast %cst_7 : f32 to vector<128x128xf32>
    %8 = arith.maximumf %6, %7 : vector<128x128xf32>
    %9 = vector.broadcast %0 : vector<128x1xf32> to vector<128x128xf32>
    %10 = arith.mulf %8, %9 : vector<128x128xf32>
    %11 = tpu.iota {dimensions = array<i32: 0>} : vector<128x1xi32>
    %c16_i32 = arith.constant 16 : i32
    %c0_i32 = arith.constant 0 : i32
    %12 = arith.cmpi eq, %c16_i32, %c0_i32 : i32
    %c1_i32 = arith.constant 1 : i32
    %13 = arith.select %12, %c1_i32, %c16_i32 : i32
    %14 = vector.broadcast %13 : i32 to vector<128x1xi32>
    %15 = arith.remsi %11, %14 : vector<128x1xi32>
    %c0_i32_8 = arith.constant 0 : i32
    %16 = vector.broadcast %c0_i32_8 : i32 to vector<128x1xi32>
    %17 = arith.cmpi ne, %15, %16 : vector<128x1xi32>
    %c0_i32_9 = arith.constant 0 : i32
    %18 = vector.broadcast %c0_i32_9 : i32 to vector<128x1xi32>
    %19 = arith.cmpi slt, %15, %18 : vector<128x1xi32>
    %c0_i32_10 = arith.constant 0 : i32
    %20 = arith.cmpi slt, %13, %c0_i32_10 : i32
    %21 = vector.broadcast %20 : i1 to vector<128x1xi1>
    %22 = vector.broadcast %21 : vector<128x1xi1> to vector<128x1xi1>
    %23 = arith.xori %19, %22 : vector<128x1xi1>
    %24 = arith.andi %23, %17 : vector<128x1xi1>
    %25 = vector.broadcast %13 : i32 to vector<128x1xi32>
    %26 = arith.addi %15, %25 : vector<128x1xi32>
    %27 = arith.select %24, %26, %15 : vector<128x1xi1>, vector<128x1xi32>
    %c1_i32_11 = arith.constant 1 : i32
    %28 = vector.broadcast %c1_i32_11 : i32 to vector<128x1xi32>
    %29 = arith.cmpi sge, %27, %28 : vector<128x1xi32>
    %c1_i32_12 = arith.constant 1 : i32
    %30 = tpu.dynamic_rotate %10 by %c1_i32_12 dim 0 : vector<128x128xf32>, i32 -> vector<128x128xf32>
    %cst_13 = arith.constant 0.000000e+00 : f32
    %31 = vector.shape_cast %29 : vector<128x1xi1> to vector<128x1xi1>
    %32 = vector.broadcast %31 : vector<128x1xi1> to vector<128x128xi1>
    %33 = vector.broadcast %cst_13 : f32 to vector<128x128xf32>
    %34 = arith.select %32, %30, %33 : vector<128x128xi1>, vector<128x128xf32>
    %35 = arith.truncf %34 : vector<128x128xf32> to vector<128x128xbf16>
    %36 = arith.truncf %10 : vector<128x128xf32> to vector<128x128xbf16>
    %c15_i32 = arith.constant 15 : i32
    %37 = vector.broadcast %c15_i32 : i32 to vector<128x1xi32>
    %38 = arith.cmpi slt, %27, %37 : vector<128x1xi32>
    %c127_i32 = arith.constant 127 : i32
    %39 = tpu.dynamic_rotate %10 by %c127_i32 dim 0 : vector<128x128xf32>, i32 -> vector<128x128xf32>
    %cst_14 = arith.constant 0.000000e+00 : f32
    %40 = vector.shape_cast %38 : vector<128x1xi1> to vector<128x1xi1>
    %41 = vector.broadcast %40 : vector<128x1xi1> to vector<128x128xi1>
    %42 = vector.broadcast %cst_14 : f32 to vector<128x128xf32>
    %43 = arith.select %41, %39, %42 : vector<128x128xi1>, vector<128x128xf32>
    %44 = arith.truncf %43 : vector<128x128xf32> to vector<128x128xbf16>
    %45 = tpu.concatenate %35, %36, %44 in 1 : vector<128x128xbf16>, vector<128x128xbf16>, vector<128x128xbf16> -> vector<128x384xbf16>
    %c0_15 = arith.constant 0 : index
    %c0_16 = arith.constant 0 : index
    %46 = vector.load %arg5[%c0_15, %c0_16] : memref<384x128xbf16, #tpu.memory_space<vmem>>, vector<384x128xbf16>
    %cst_17 = arith.constant dense<0.000000e+00> : vector<128x128xf32>
    %47 = tpu.matmul %45, %46, %cst_17 {dimension_numbers = #tpu.dot_dimension_numbers<[1], [0], [0], [1], [0, 0, 1, 1], [], []>} : vector<128x384xbf16>, vector<384x128xbf16>, vector<128x128xf32> -> vector<128x128xf32>
    %c0_18 = arith.constant 0 : index
    %c0_19 = arith.constant 0 : index
    %48 = vector.load %arg6[%c0_18, %c0_19] : memref<1x128xf32, #tpu.memory_space<vmem>>, vector<1x128xf32>
    %49 = vector.broadcast %48 : vector<1x128xf32> to vector<128x128xf32>
    %50 = arith.addf %47, %49 : vector<128x128xf32>
    %cst_20 = arith.constant 0.000000e+00 : f32
    %51 = vector.broadcast %cst_20 : f32 to vector<128x128xf32>
    %52 = arith.maximumf %50, %51 : vector<128x128xf32>
    %53 = vector.broadcast %0 : vector<128x1xf32> to vector<128x128xf32>
    %54 = arith.mulf %52, %53 : vector<128x128xf32>
    %55 = vector.shape_cast %54 : vector<128x128xf32> to vector<8x16x128xf32>
    %cst_21 = arith.constant dense<0xFF800000> : vector<8x128xf32>
    %56 = vector.multi_reduction <maximumf>, %55, %cst_21 [1] : vector<8x16x128xf32> to vector<8x128xf32>
    %57 = arith.truncf %56 : vector<8x128xf32> to vector<8x128xbf16>
    %c0_22 = arith.constant 0 : index
    %c0_23 = arith.constant 0 : index
    %58 = vector.load %arg7[%c0_22, %c0_23] : memref<128x128xbf16, #tpu.memory_space<vmem>>, vector<128x128xbf16>
    %cst_24 = arith.constant dense<0.000000e+00> : vector<8x128xf32>
    %59 = tpu.matmul %57, %58, %cst_24 {dimension_numbers = #tpu.dot_dimension_numbers<[1], [0], [0], [1], [0, 0, 1, 1], [], []>} : vector<8x128xbf16>, vector<128x128xbf16>, vector<8x128xf32> -> vector<8x128xf32>
    %c0_25 = arith.constant 0 : index
    %c0_26 = arith.constant 0 : index
    %60 = vector.load %arg8[%c0_25, %c0_26] : memref<1x128xf32, #tpu.memory_space<vmem>>, vector<1x128xf32>
    %61 = vector.broadcast %60 : vector<1x128xf32> to vector<8x128xf32>
    %62 = arith.addf %59, %61 : vector<8x128xf32>
    %cst_27 = arith.constant 0.000000e+00 : f32
    %63 = vector.broadcast %cst_27 : f32 to vector<8x128xf32>
    %64 = arith.maximumf %62, %63 : vector<8x128xf32>
    %65 = arith.truncf %64 : vector<8x128xf32> to vector<8x128xbf16>
    %c0_28 = arith.constant 0 : index
    %c0_29 = arith.constant 0 : index
    %66 = vector.load %arg9[%c0_28, %c0_29] : memref<128x128xbf16, #tpu.memory_space<vmem>>, vector<128x128xbf16>
    %cst_30 = arith.constant dense<0.000000e+00> : vector<8x128xf32>
    %67 = tpu.matmul %65, %66, %cst_30 {dimension_numbers = #tpu.dot_dimension_numbers<[1], [0], [0], [1], [0, 0, 1, 1], [], []>} : vector<8x128xbf16>, vector<128x128xbf16>, vector<8x128xf32> -> vector<8x128xf32>
    %c0_31 = arith.constant 0 : index
    %c0_32 = arith.constant 0 : index
    %68 = vector.load %arg10[%c0_31, %c0_32] : memref<1x128xf32, #tpu.memory_space<vmem>>, vector<1x128xf32>
    %69 = vector.broadcast %68 : vector<1x128xf32> to vector<8x128xf32>
    %70 = arith.addf %67, %69 : vector<8x128xf32>
    %c0_33 = arith.constant 0 : index
    %c0_34 = arith.constant 0 : index
    %71 = vector.load %arg11[%c0_33, %c0_34] : memref<8x128xf32, #tpu.memory_space<vmem>>, vector<8x128xf32>
    tpu.vector_store %arg11[%c0_33, %c0_34], %70 {strides = array<i32>} : memref<8x128xf32, #tpu.memory_space<vmem>>, vector<8x128xf32>,
    return
  }
  func.func @transform_0(%arg0: i32) -> (i32, i32) {
    %c0_i32 = arith.constant 0 : i32
    %c0_i32_0 = arith.constant 0 : i32
    return %arg0, %c0_i32 : i32, i32
  }
  func.func @transform_1(%arg0: i32) -> (i32, i32) {
    %c0_i32 = arith.constant 0 : i32
    %c0_i32_0 = arith.constant 0 : i32
    return %arg0, %c0_i32 : i32, i32
  }
  func.func @transform_2(%arg0: i32) -> (i32, i32) {
    %c0_i32 = arith.constant 0 : i32
    %c0_i32_0 = arith.constant 0 : i32
    %c0_i32_1 = arith.constant 0 : i32
    return %c0_i32, %c0_i32_0 : i32, i32
  }
  func.func @transform_3(%arg0: i32) -> (i32, i32) {
    %c0_i32 = arith.constant 0 : i32
    %c0_i32_0 = arith.constant 0 : i32
    %c0_i32_1 = arith.constant 0 : i32
    return %c0_i32, %c0_i32_0 : i32, i32
  }
  func.func @transform_4(%arg0: i32) -> (i32, i32) {
    %c0_i32 = arith.constant 0 : i32
    %c0_i32_0 = arith.constant 0 : i32
    %c0_i32_1 = arith.constant 0 : i32
    return %c0_i32, %c0_i32_0 : i32, i32
  }
  func.func @transform_5(%arg0: i32) -> (i32, i32) {
    %c0_i32 = arith.constant 0 : i32
    %c0_i32_0 = arith.constant 0 : i32
    %c0_i32_1 = arith.constant 0 : i32
    return %c0_i32, %c0_i32_0 : i32, i32
  }
  func.func @transform_6(%arg0: i32) -> (i32, i32) {
    %c0_i32 = arith.constant 0 : i32
    %c0_i32_0 = arith.constant 0 : i32
    %c0_i32_1 = arith.constant 0 : i32
    return %c0_i32, %c0_i32_0 : i32, i32
  }
  func.func @transform_7(%arg0: i32) -> (i32, i32) {
    %c0_i32 = arith.constant 0 : i32
    %c0_i32_0 = arith.constant 0 : i32
    %c0_i32_1 = arith.constant 0 : i32
    return %c0_i32, %c0_i32_0 : i32, i32
  }
  func.func @transform_8(%arg0: i32) -> (i32, i32) {
    %c0_i32 = arith.constant 0 : i32
    %c0_i32_0 = arith.constant 0 : i32
    %c0_i32_1 = arith.constant 0 : i32
    return %c0_i32, %c0_i32_0 : i32, i32
  }
  func.func @transform_9(%arg0: i32) -> (i32, i32) {
    %c0_i32 = arith.constant 0 : i32
    %c0_i32_0 = arith.constant 0 : i32
    %c0_i32_1 = arith.constant 0 : i32
    return %c0_i32, %c0_i32_0 : i32, i32
  }
  func.func @transform_10(%arg0: i32) -> (i32, i32) {
    %c0_i32 = arith.constant 0 : i32
    %c0_i32_0 = arith.constant 0 : i32
    return %arg0, %c0_i32 : i32, i32
  }
}

</mosaic_0001>

<bundles_post_ra>
// kernel: _lambda_.1
= control target key start
LH: loop header
LB: loop body
LE: loop exit
PB: predicated region body
PF: predicated region fallthrough
CT: control target
= control target key end

     0   :  { %v1961_v1 = vmov 0   ;;  %v396_v59 = vlaneseq  ;;  %vm1962_vm5 = vmmov 1   ;;  %s2706_s2 = inlined_call_operand.vmem [shape: bf16[128,128], index: 2, kind: input, shape index: {}]   ;;  %s2707_s0 = inlined_call_operand.vmem [shape: bf16[128,128], index: 0, kind: input, shape index: {}]   ;;  %s2708_s1 = inlined_call_operand.vmem [shape: f32[128,1], index: 1, kind: input, shape index: {}]   ;;  %s2709_s4 = inlined_call_operand.vmem [shape: bf16[384,128], index: 4, kind: input, shape index: {}]   ;;  %s2710_s3 = inlined_call_operand.vmem [shape: f32[1,128], index: 3, kind: input, shape index: {}, may-alias: {3,5,7}]   ;;  %s2711_s6 = inlined_call_operand.vmem [shape: bf16[128,128], index: 6, kind: input, shape index: {}]   ;;  %s2712_s8 = inlined_call_operand.vmem [shape: bf16[128,128], index: 8, kind: input, shape index: {}]   ;;  %s2713_s5 = inlined_call_operand.vmem [shape: f32[1,128], index: 5, kind: input, shape index: {}, may-alias: {3,5,7}]   ;;  %s2714_s7 = inlined_call_operand.vmem [shape: f32[1,128], index: 7, kind: input, shape index: {}, may-alias: {3,5,7}]   ;;  %s2715_s9 = inlined_call_operand.vmem [shape: f32[1,128], index: 9, kind: input, shape index: {}]   ;;  %s2716_s10 = inlined_call_operand.vmem [shape: f32[8,128], index: 10, kind: output, shape index: {}]  }
   0x1   :  { %v1905_v0 = vld [vmem:[%s2706_s2] sm:$0xff]   ;;  %1903 = vset.pattern.permute.xlu0 %v1961_v1  ;;  %1904 = vset.pattern.permute.xlu1 %v1961_v1  ;;  %v1906_v2 = vld [vmem:[%s2706_s2 + $0x8] sm:$0xff]   ;;  %v1907_v3 = vld [vmem:[%s2706_s2 + $0x10] sm:$0xff]  }
   0x2   :  { %1795 = vmatprep.subr.bf16.mxu0 %v1905_v0  ;;  %v1908_v4 = vld [vmem:[%s2706_s2 + $0x18] sm:$0xff]   ;;  %v1913_v5 = vld [vmem:[%s2707_s0] sm:$0xff]   ;;  %v1910_v7 = vld [vmem:[%s2706_s2 + $0x28] sm:$0xff]   ;;  %v2196_v62 = vshrl.u32 %v396_v59, 7 }
   0x3   :  { %1796 = vmatpush3.bf16.msra.mxu0 %v1905_v0  ;;  %1811 = vmatprep.mubr.bf16.mxu0 %v1913_v5  ;;  %v1909_v6 = vld [vmem:[%s2706_s2 + $0x20] sm:$0xff]   ;;  %v51_v9 = vld [vmem:[%s2708_s1 + $0x78] sm:$0xff]  ;;  %v37_v10 = vld [vmem:[%s2708_s1 + $0x8] sm:$0xff] }
   0x4   :  { %1797 = vmatprep.subr.bf16.mxu0 %v1906_v2  ;;  %v36_v8 = vld [vmem:[%s2708_s1] sm:$0xff]  ;;  %377 = vperm.xlu1 %1904, %v51_v9   ;;  %v38_v11 = vld [vmem:[%s2708_s1 + $0x10] sm:$0xff]  ;;  %v39_v13 = vld [vmem:[%s2708_s1 + $0x18] sm:$0xff]  ;;  %v398_v63 = vadd.s32 8, %v2196_v62  ;;  %vm750_vm0 = vcmp.lt.s32.totalorder %v2196_v62, 7  ;;  %vm637_vm2 = vcmp.lt.s32.totalorder %v2196_v62, 1 }
   0x5   :  { %302 = vperm.xlu0 %1903, %v36_v8   ;;  %v1911_v12 = vld [vmem:[%s2706_s2 + $0x30] sm:$0xff]   ;;  %v40_v14 = vld [vmem:[%s2708_s1 + $0x20] sm:$0xff]  ;;  %v1912_v15 = vld [vmem:[%s2706_s2 + $0x38] sm:$0xff]  }
   0x6   :  { %v41_v16 = vld [vmem:[%s2708_s1 + $0x28] sm:$0xff]  ;;  %v42_v17 = vld [vmem:[%s2708_s1 + $0x30] sm:$0xff]  ;;  %v1921_v18 = vld [vmem:[%s2709_s4 + $0x80] sm:$0xff]  }
   0x7   :  { %1798 = vmatpush3.bf16.msra.mxu0 %v1906_v2  ;;  %v1914_v19 = vld [vmem:[%s2707_s0 + $0x8] sm:$0xff]   ;;  %v43_v20 = vld [vmem:[%s2708_s1 + $0x38] sm:$0xff]  ;;  %v44_v21 = vld [vmem:[%s2708_s1 + $0x40] sm:$0xff] }
   0x8   :  { %1799 = vmatprep.subr.bf16.mxu0 %v1907_v3  ;;  %312 = vperm.xlu1 %1904, %v38_v11   ;;  %v1915_v22 = vld [vmem:[%s2707_s0 + $0x10] sm:$0xff]   ;;  %v1922_v23 = vld [vmem:[%s2709_s4 + $0x88] sm:$0xff]   ;;  %v1916_v27 = vld [vmem:[%s2707_s0 + $0x18] sm:$0xff]   ;;  %v2218_v11 = vadd.s32 72, %v2196_v62 }
   0x9   :  { %307 = vperm.xlu0 %1903, %v37_v10   ;;  %v45_v24 = vld [vmem:[%s2708_s1 + $0x48] sm:$0xff]  ;;  %v46_v25 = vld [vmem:[%s2708_s1 + $0x50] sm:$0xff]  ;;  %v47_v28 = vld [vmem:[%s2708_s1 + $0x58] sm:$0xff] }
   0xa   :  { %v1923_v26 = vld [vmem:[%s2709_s4 + $0x90] sm:$0xff]   ;;  %v48_v29 = vld [vmem:[%s2708_s1 + $0x60] sm:$0xff]  ;;  %v49_v31 = vld [vmem:[%s2708_s1 + $0x68] sm:$0xff] }
   0xb   :  { %1800 = vmatpush3.bf16.msra.mxu0 %v1907_v3  ;;  %v1917_v30 = vld [vmem:[%s2707_s0 + $0x20] sm:$0xff]   ;;  %v50_v32 = vld [vmem:[%s2708_s1 + $0x70] sm:$0xff]  ;;  %v1918_v33 = vld [vmem:[%s2707_s0 + $0x28] sm:$0xff]   ;;  %v424_v3 = vand.u32 15, %v398_v63 }
   0xc   :  { %1801 = vmatprep.subr.bf16.mxu0 %v1908_v4  ;;  %322 = vperm.xlu1 %1904, %v40_v14   ;;  %v1919_v34 = vld [vmem:[%s2707_s0 + $0x30] sm:$0xff]   ;;  %v1920_v35 = vld [vmem:[%s2707_s0 + $0x38] sm:$0xff]   ;;  %v1925_v37 = vld [vmem:[%s2709_s4 + $0xa0] sm:$0xff]  }
   0xd   :  { %317 = vperm.xlu0 %1903, %v39_v13   ;;  %v1924_v36 = vld [vmem:[%s2709_s4 + $0x98] sm:$0xff]   ;;  %v1926_v38 = vld [vmem:[%s2709_s4 + $0x40] sm:$0xff]   ;;  %v1928_v40 = vld [vmem:[%s2709_s4 + $0xa8] sm:$0xff]   ;;  %vm2226_vm1 = vcmp.lt.s32.totalorder %v424_v3, 15 }
   0xe   :  { %v1927_v39 = vld [vmem:[%s2709_s4] sm:$0xff]   ;;  %1697 = vmatprep.subr.bf16.mxu1 %v1926_v38  ;;  %v1929_v41 = vld [vmem:[%s2709_s4 + $0x48] sm:$0xff]   ;;  %v1931_v43 = vld [vmem:[%s2709_s4 + $0xb0] sm:$0xff]   ;;  %v2258_v38 = vadd.s32 120, %v2196_v62 }
   0xf   :  { %1802 = vmatpush3.bf16.msra.mxu0 %v1908_v4  ;;  %1698 = vmatpush3.bf16.msra.mxu1 %v1927_v39  ;;  %v1930_v42 = vld [vmem:[%s2709_s4 + $0x8] sm:$0xff]   ;;  %v1932_v44 = vld [vmem:[%s2709_s4 + $0x50] sm:$0xff]   ;;  %v1934_v46 = vld [vmem:[%s2709_s4 + $0xb8] sm:$0xff]   ;;  %v400_v4 = vadd.s32 24, %v2196_v62  ;;  %v2261_v39 = vadd.s32 16, %v2196_v62 }
  0x10   :  { %1803 = vmatprep.subr.bf16.mxu0 %v1909_v6  ;;  %332 = vperm.xlu1 %1904, %v42_v17   ;;  %v1933_v45 = vld [vmem:[%s2709_s4 + $0x10] sm:$0xff]   ;;  %v1935_v47 = vld [vmem:[%s2709_s4 + $0x58] sm:$0xff]   ;;  %v1937_v49 = vld [vmem:[%s2709_s4 + $0x60] sm:$0xff]   ;;  %v2232_v17 = vadd.s32 104, %v2196_v62 }
  0x11   :  { %327 = vperm.xlu0 %1903, %v41_v16   ;;  %1699 = vmatprep.subr.bf16.mxu1 %v1929_v41  ;;  %v1936_v48 = vld [vmem:[%s2709_s4 + $0x18] sm:$0xff]   ;;  %v1938_v50 = vld [vmem:[%s2709_s4 + $0x20] sm:$0xff]   ;;  %v1939_v51 = vld [vmem:[%s2709_s4 + $0x68] sm:$0xff]  }
  0x12   :  { %v1940_v52 = vld [vmem:[%s2709_s4 + $0x28] sm:$0xff]   ;;  %v1941_v53 = vld [vmem:[%s2709_s4 + $0x70] sm:$0xff]   ;;  %v1943_v55 = vld [vmem:[%s2709_s4 + $0x78] sm:$0xff]  }
  0x13   :  { %1804 = vmatpush3.bf16.msra.mxu0 %v1909_v6  ;;  %1700 = vmatpush3.bf16.msra.mxu1 %v1930_v42  ;;  %v1942_v54 = vld [vmem:[%s2709_s4 + $0x30] sm:$0xff]   ;;  %v1944_v56 = vld [vmem:[%s2709_s4 + $0x38] sm:$0xff]   ;;  %v2206_v2 = vld [vmem:[%s2710_s3] ss:$0 sm:$0xff]  ;;  %v402_v6 = vadd.s32 40, %v2196_v62 }
  0x14   :  { %1805 = vmatprep.subr.bf16.mxu0 %v1910_v7  ;;  %342 = vperm.xlu1 %1904, %v44_v21   ;;  %v438_v21 = vand.u32 15, %v400_v4  ;;  %vm1639_vm6 = vmpackc.low %vm2226_vm1, %vm1962_vm5 }
  0x15   :  { %337 = vperm.xlu0 %1903, %v43_v20   ;;  %1701 = vmatprep.subr.bf16.mxu1 %v1932_v44 }
  0x16   :  { %vm2253_vm3 = vcmp.lt.s32.totalorder %v438_v21, 15 }
  0x17   :  { %1806 = vmatpush3.bf16.msra.mxu0 %v1910_v7  ;;  %1702 = vmatpush3.bf16.msra.mxu1 %v1933_v45  ;;  %v2211_v7 = vadd.s32 56, %v2196_v62  ;;  %vm1642_vm9 = vmpackc.low %vm2253_vm3, %vm1962_vm5 }
  0x18   :  { %1807 = vmatprep.subr.bf16.mxu0 %v1911_v12  ;;  %352 = vperm.xlu1 %1904, %v46_v25  }
  0x19   :  { %347 = vperm.xlu0 %1903, %v45_v24   ;;  %1703 = vmatprep.subr.bf16.mxu1 %v1935_v47  ;;  %v452_v24 = vand.u32 15, %v402_v6  ;;  %v466_v25 = vand.u32 15, %v2211_v7 }
  0x1b   :  { %1808 = vmatpush3.bf16.msra.mxu0 %v1911_v12  ;;  %1704 = vmatpush3.bf16.msra.mxu1 %v1936_v48  ;;  %v2221_v12 = vadd.s32 88, %v2196_v62  ;;  %vm2272_vm4 = vcmp.lt.s32.totalorder %v452_v24, 15  ;;  %vm2324_vm7 = vcmp.lt.s32.totalorder %v466_v25, 15 }
  0x1c   :  { %1809 = vmatprep.subr.bf16.mxu0 %v1912_v15  ;;  %362 = vperm.xlu1 %1904, %v48_v29   ;;  %vm1645_vm10 = vmpackc.low %vm2272_vm4, %vm1962_vm5 }
  0x1d   :  { %357 = vperm.xlu0 %1903, %v47_v28   ;;  %1705 = vmatprep.subr.bf16.mxu1 %v1937_v49  ;;  %v480_v28 = vand.u32 15, %v2218_v11  ;;  %v494_v29 = vand.u32 15, %v2221_v12  ;;  %vm1648_vm14 = vmpackc.low %vm2324_vm7, %vm1962_vm5 }
  0x1f   :  { %1810 = vmatpush3.bf16.msra.mxu0 %v1912_v15  ;;  %1706 = vmatpush3.bf16.msra.mxu1 %v1938_v50  ;;  %vm2342_vm8 = vcmp.lt.s32.totalorder %v480_v28, 15  ;;  %vm2396_vm11 = vcmp.lt.s32.totalorder %v494_v29, 15 }
  0x20   :  { %1827 = vmatprep.subr.bf16.mxu0 %v1921_v18  ;;  %372 = vperm.xlu1 %1904, %v50_v32   ;;  %v417_v32 = vand.u32 15, %v2196_v62  ;;  %vm1651_vm15 = vmpackc.low %vm2342_vm8, %vm1962_vm5 }
  0x21   :  { %367 = vperm.xlu0 %1903, %v49_v31   ;;  %1707 = vmatprep.subr.bf16.mxu1 %v1939_v51  ;;  %vm1654_vm1 = vmpackc.low %vm2396_vm11, %vm1962_vm5 }
  0x22   :  { %1812 = vmatmul.mubr.bf16.vlgmr.msra.gmra.mrb[0].mxu0 %v1914_v19  ;;  %vm2409_vm12 = vcmp.ge.s32.totalorder %v417_v32, 1 }
  0x23   :  { %1815 = vmatprep.mubr.bf16.mxu0 %v1915_v22  ;;  %1828 = vmatpush3.bf16.msra.mxu0 %v1921_v18  ;;  %vm1615_vm3 = vmpackc.low %vm1962_vm5, %vm2409_vm12 }
  0x24   :  { %1829 = vmatprep.subr.bf16.mxu0 %v1922_v23  ;;  %1708 = vmatpush3.bf16.msra.mxu1 %v1940_v52 }
  0x25   :  { %1709 = vmatprep.subr.bf16.mxu1 %v1941_v53 }
  0x27   :  { %1830 = vmatpush3.bf16.msra.mxu0 %v1922_v23 }
  0x28   :  { %1831 = vmatprep.subr.bf16.mxu0 %v1923_v26  ;;  %1710 = vmatpush3.bf16.msra.mxu1 %v1942_v54 }
  0x29   :  { %1711 = vmatprep.subr.bf16.mxu1 %v1943_v55 }
  0x2a   :  { %1816 = vmatmul.mubr.bf16.gmra.mrb[4].mxu0 %v1916_v27 }
  0x2b   :  { %1819 = vmatprep.mubr.bf16.mxu0 %v1917_v30  ;;  %1832 = vmatpush3.bf16.msra.mxu0 %v1923_v26 }
  0x2c   :  { %1833 = vmatprep.subr.bf16.mxu0 %v1924_v36  ;;  %1712 = vmatpush3.bf16.msra.mxu1 %v1944_v56 }
  0x2f   :  { %1834 = vmatpush3.bf16.msra.mxu0 %v1924_v36 }
  0x30   :  { %1835 = vmatprep.subr.bf16.mxu0 %v1925_v37 }
  0x32   :  { %1820 = vmatmul.mubr.bf16.gmra.mrb[8].mxu0 %v1918_v33  ;;  %v508_v33 = vand.u32 15, %v2232_v17 }
  0x33   :  { %1823 = vmatprep.mubr.bf16.mxu0 %v1919_v34  ;;  %1836 = vmatpush3.bf16.msra.mxu0 %v1925_v37 }
  0x34   :  { %1837 = vmatprep.subr.bf16.mxu0 %v1928_v40  ;;  %vm2424_vm13 = vcmp.lt.s32.totalorder %v508_v33, 15 }
  0x35   :  { %vm1657_vm4 = vmpackc.low %vm2424_vm13, %vm1962_vm5 }
  0x37   :  { %1838 = vmatpush3.bf16.msra.mxu0 %v1928_v40 }
  0x38   :  { %1839 = vmatprep.subr.bf16.mxu0 %v1931_v43 }
  0x3a   :  { %1824 = vmatmul.mubr.bf16.gmra.mrb[12].mxu0 %v1920_v35 }
  0x3b   :  { %1840 = vmatpush3.bf16.msra.mxu0 %v1931_v43 }
  0x3c   :  { %1841 = vmatprep.subr.bf16.mxu0 %v1934_v46 }
  0x3f   :  { %1842 = vmatpush3.bf16.msra.mxu0 %v1934_v46 }
  0x83   :  { %v2190_v58 = vpop.permute.xlu1 %377 }
  0x84   :  { %v2188_v57 = vpop.permute.xlu0 %302  ;;  %2720 = vst [vmem:[#allocation2_spill] sm:$0xff] %v2190_v58 }
  0x87   :  { %v2194_v61 = vpop.permute.xlu1 %312 }
  0x88   :  { %v2192_v60 = vpop.permute.xlu0 %307 }
  0x8b   :  { %v2201_v1 = vpop.permute.xlu1 %322 }
  0x8c   :  { %v2199_v0 = vpop.permute.xlu0 %317 }
  0x8f   :  { %v2224_v15 = vpop.permute.xlu1 %332 }
  0x90   :  { %v2215_v10 = vpop.permute.xlu0 %327 }
  0x93   :  { %v2267_v45 = vpop.permute.xlu1 %342 }
  0x94   :  { %v2251_v36 = vpop.permute.xlu0 %337 }
  0xf5   :  { %v1813_v5 = vpop.f32.mrb[0].mxu0 }
  0xf6   :  { %v230_v8 = vadd.f32 %v1813_v5, %v2206_v2  ;;  %v221_v9 = vpop.f32.mrb[1].mxu0 }
  0xf7   :  { %v222_v13 = vadd.f32 %v2206_v2, %v221_v9  ;;  %v1814_v14 = vpop.f32.mrb[2].mxu0 }
  0xf8   :  { %v286_v18 = vmax.f32 %v230_v8, 0.0  ;;  %v233_v19 = vadd.f32 %v1814_v14, %v2206_v2  ;;  %v224_v20 = vpop.f32.mrb[3].mxu0 }
  0xf9   :  { %v284_v22 = vmax.f32 %v222_v13, 0.0  ;;  %v225_v23 = vadd.f32 %v2206_v2, %v224_v20 }
  0xfa   :  { %v287_v26 = vmax.f32 %v233_v19, 0.0  ;;  %v2238_v27 = vmul.f32 %v2194_v61, %v286_v18 }
  0xfb   :  { %v2243_v30 = vmul.f32 %v2188_v57, %v284_v22  ;;  %v285_v31 = vmax.f32 %v225_v23, 0.0  ;;  %v2311_v22 = vpop.permute.xlu0 %347  ;;  %v2313_v23 = vpop.permute.xlu1 %352 }
  0xfc   :  { %v623_v34 = vrot.slane %v2238_v27, 7  ;;  %v2249_v35 = vmul.f32 %v2199_v0, %v287_v26  ;;  %v736_v43 = vrot.slane %v2238_v27, 1 }
  0xfd   :  { %v2718_v40 = vrot.slane %v2243_v30, 7  ;;  %v2717_v41 = vrot.slane %v2243_v30, 1  ;;  %v381_v42 = vmul.f32 %v2192_v60, %v285_v31  ;;  %v1817_v44 = vpop.f32.mrb[4].mxu0 }
  0xfe   :  { %v624_v46 = vrot.slane %v2249_v35, 7  ;;  %v737_v47 = vrot.slane %v2249_v35, 1  ;;  %v246_v48 = vadd.f32 %v1817_v44, %v2206_v2  ;;  %v237_v49 = vpop.f32.mrb[5].mxu0 }
  0xff   :  { %v622_v52 = vrot.slane %v381_v42, 7  ;;  %v735_v53 = vrot.slane %v381_v42, 1  ;;  %v238_v54 = vadd.f32 %v2206_v2, %v237_v49  ;;  %v1818_v55 = vpop.f32.mrb[6].mxu0  ;;  %v710_v56 = vpack.c.bf16 %v381_v42, %v2243_v30 }
 0x100   :  { %v763_v59 = vsel %vm750_vm0, %v736_v43, %v737_v47  ;;  %v290_v63 = vmax.f32 %v246_v48, 0.0  ;;  %v249_v3 = vadd.f32 %v1818_v55, %v2206_v2  ;;  %v240_v4 = vpop.f32.mrb[7].mxu0  ;;  %v2287_v5 = vsel %vm637_vm2, %v623_v34, %v624_v46 }
 0x101   :  { %v288_v6 = vmax.f32 %v238_v54, 0.0  ;;  %v241_v7 = vadd.f32 %v2206_v2, %v240_v4  ;;  %1054 = vmatprep.mubr.bf16.mxu1 %v710_v56  ;;  %v764_v8 = vsel %vm750_vm0, %v735_v53, %v736_v43  ;;  %v765_v9 = vsel %vm750_vm0, %v2717_v41, %v735_v53 }
 0x102   :  { %v291_v13 = vmax.f32 %v249_v3, 0.0  ;;  %v2300_v14 = vmul.f32 %v2224_v15, %v290_v63  ;;  %v1640_v18 = vpack.c.bf16 %v764_v8, %v765_v9  ;;  %v2306_v19 = vsel %vm637_vm2, %v2718_v40, %v622_v52  ;;  %v2360_v3 = vpop.permute.xlu0 %357 }
 0x103   :  { %v2309_v20 = vmul.f32 %v2201_v1, %v288_v6  ;;  %v289_v21 = vmax.f32 %v241_v7, 0.0  ;;  %v2318_v24 = vsel %vm637_vm2, %v622_v52, %v623_v34 }
 0x104   :  { %v627_v26 = vrot.slane %v2300_v14, 7  ;;  %v2322_v31 = vmul.f32 %v2251_v36, %v291_v13  ;;  %1843 = vmatprep.mubr.msk.bf16.mxu0 %vm1639_vm6, %v1640_v18  ;;  %v740_v52 = vrot.slane %v2300_v14, 1 }
 0x105   :  { %v625_v48 = vrot.slane %v2309_v20, 7  ;;  %v738_v34 = vrot.slane %v2309_v20, 1  ;;  %v2334_v49 = vmul.f32 %v2215_v10, %v289_v21  ;;  %v1821_v53 = vpop.f32.mrb[8].mxu0 }
 0x106   :  { %v628_v25 = vrot.slane %v2322_v31, 7  ;;  %v741_v54 = vrot.slane %v2322_v31, 1  ;;  %v262_v55 = vadd.f32 %v1821_v53, %v2206_v2  ;;  %v253_v56 = vpop.f32.mrb[9].mxu0 }
 0x107   :  { %v762_v4 = vsel %vm750_vm0, %v737_v47, %v738_v34  ;;  %v626_v6 = vrot.slane %v2334_v49, 7  ;;  %v739_v7 = vrot.slane %v2334_v49, 1  ;;  %v254_v8 = vadd.f32 %v2206_v2, %v253_v56  ;;  %v1822_v9 = vpop.f32.mrb[10].mxu0 }
 0x108   :  { %v1643_v11 = vpack.c.bf16 %v762_v4, %v763_v59  ;;  %v294_v28 = vmax.f32 %v262_v55, 0.0  ;;  %v265_v13 = vadd.f32 %v1822_v9, %v2206_v2  ;;  %v256_v18 = vpop.f32.mrb[11].mxu0  ;;  %v759_v21 = vsel %vm750_vm0, %v740_v52, %v741_v54  ;;  %v2369_v59 = vpop.permute.xlu1 %362 }
 0x109   :  { %v292_v47 = vmax.f32 %v254_v8, 0.0  ;;  %v257_v53 = vadd.f32 %v2206_v2, %v256_v18  ;;  %v760_v56 = vsel %vm750_vm0, %v739_v7, %v740_v52  ;;  %v761_v37 = vsel %vm750_vm0, %v738_v34, %v739_v7 }
 0x10a   :  { %v295_v55 = vmax.f32 %v265_v13, 0.0  ;;  %v2372_v4 = vmul.f32 %v2313_v23, %v294_v28  ;;  %1844 = vmatmul.mubr.msk.bf16.vlgmr.msra.gmra.mrb[16].mxu0 %vm1642_vm9, %v1643_v11  ;;  %v1646_v8 = vpack.c.bf16 %v760_v56, %v761_v37  ;;  %v2381_v34 = vsel %vm637_vm2, %v625_v48, %v626_v6 }
 0x10b   :  { %v2377_v52 = vmul.f32 %v2267_v45, %v292_v47  ;;  %v293_v18 = vmax.f32 %v257_v53, 0.0  ;;  %v2387_v50 = vsel %vm637_vm2, %v624_v46, %v625_v48  ;;  %v2417_v12 = vsel %vm637_vm2, %v627_v26, %v628_v25 }
 0x10c   :  { %v744_v11 = vrot.slane %v2372_v4, 1  ;;  %v2392_v28 = vmul.f32 %v2360_v3, %v295_v55  ;;  %1847 = vmatprep.mubr.msk.bf16.mxu0 %vm1645_vm10, %v1646_v8  ;;  %v2430_v47 = vsel %vm637_vm2, %v626_v6, %v627_v26  ;;  %v2435_v51 = vpop.permute.xlu1 %372  ;;  %v2740_v13 = vrot.slane %v2243_v30, 1 }
 0x10d   :  { %v629_v46 = vrot.slane %v2377_v52, 7  ;;  %v742_v48 = vrot.slane %v2377_v52, 1  ;;  %v2405_v53 = vmul.f32 %v2311_v22, %v293_v18  ;;  %v1825_v56 = vpop.f32.mrb[12].mxu0 }
 0x10e   :  { %v632_v29 = vrot.slane %v2392_v28, 7  ;;  %v745_v55 = vrot.slane %v2392_v28, 1  ;;  %v278_v8 = vadd.f32 %v1825_v56, %v2206_v2  ;;  %v269_v18 = vpop.f32.mrb[13].mxu0 }
 0x10f   :  { %v630_v9 = vrot.slane %v2405_v53, 7  ;;  %v743_v44 = vrot.slane %v2405_v53, 1  ;;  %v270_v43 = vadd.f32 %v2206_v2, %v269_v18  ;;  %v1826_v16 = vpop.f32.mrb[14].mxu0  ;;  %v758_v17 = vsel %vm750_vm0, %v741_v54, %v742_v48 }
 0x110   :  { %v298_v33 = vmax.f32 %v278_v8, 0.0  ;;  %v281_v26 = vadd.f32 %v1826_v16, %v2206_v2  ;;  %v272_v6 = vpop.f32.mrb[15].mxu0  ;;  %v1649_v56 = vpack.c.bf16 %v758_v17, %v759_v21  ;;  %v755_v41 = vsel %vm750_vm0, %v744_v11, %v745_v55 }
 0x111   :  { %v296_v40 = vmax.f32 %v270_v43, 0.0  ;;  %v273_v18 = vadd.f32 %v2206_v2, %v272_v6  ;;  %v756_v7 = vsel %vm750_vm0, %v743_v44, %v744_v11  ;;  %v757_v54 = vsel %vm750_vm0, %v742_v48, %v743_v44  ;;  %v2467_v48 = vpop.permute.xlu0 %367 }
 0x112   :  { %v299_v42 = vmax.f32 %v281_v26, 0.0  ;;  %v2454_v16 = vmul.f32 %v2435_v51, %v298_v33  ;;  %1848 = vmatmul.mubr.msk.bf16.gmra.mrb[20].mxu0 %vm1648_vm14, %v1649_v56  ;;  %v1652_v21 = vpack.c.bf16 %v756_v7, %v757_v54  ;;  %v2465_v63 = vsel %vm637_vm2, %v629_v46, %v630_v9 }
 0x113   :  { %v2459_v2 = vmul.f32 %v2369_v59, %v296_v40  ;;  %v297_v11 = vmax.f32 %v273_v18, 0.0  ;;  %v2478_v40 = vsel %vm637_vm2, %v628_v25, %v629_v46  ;;  %v2737_v25 = vrot.slane %v2372_v4, 7 }
 0x114   :  { %v2470_v8 = vmul.f32 %v2190_v58, %v299_v42  ;;  %v635_v7 = vrot.slane %v2454_v16, 7  ;;  %v748_v17 = vrot.slane %v2454_v16, 1  ;;  %1851 = vmatprep.mubr.msk.bf16.mxu0 %vm1651_vm15, %v1652_v21  ;;  %v1628_v56 = vpack.c.bf16 %v2465_v63, %v2478_v40 }
 0x115   :  { %v633_v33 = vrot.slane %v2459_v2, 7  ;;  %v746_v26 = vrot.slane %v2459_v2, 1  ;;  %v2483_v6 = vmul.f32 %v2467_v48, %v297_v11  ;;  %v715_v42 = vpack.c.bf16 %v2392_v28, %v2372_v4 }
 0x116   :  { %v636_v18 = vrot.slane %v2470_v8, 7  ;;  %v749_v54 = vrot.slane %v2470_v8, 1  ;;  %v642_v46 = vsel %vm637_vm2, %v2737_v25, %v632_v29  ;;  %v2738_v40 = vmov %v2737_v25 }
 0x117   :  { %v634_v21 = vrot.slane %v2483_v6, 7  ;;  %v747_v11 = vrot.slane %v2483_v6, 1  ;;  %v754_v63 = vsel %vm750_vm0, %v745_v55, %v746_v26  ;;  %v643_v44 = vsel %vm637_vm2, %v630_v9, %v2738_v40 }
 0x118   :  { %v1655_v43 = vpack.c.bf16 %v754_v63, %v755_v41  ;;  %v2739_v58 = vrot.slane %v2243_v30, 7  ;;  %v751_v55 = vsel %vm750_vm0, %v748_v17, %v749_v54  ;;  %v766_v4 = vsel %vm750_vm0, %v749_v54, %v2740_v13  ;;  %v1949_v54 = vld [vmem:[%s2711_s6 + $0x20] sm:$0xff]   ;;  %v1956_v13 = vld [vmem:[%s2712_s8 + $0x18] sm:$0xff]  }
 0x119   :  { %v752_v41 = vsel %vm750_vm0, %v747_v11, %v748_v17  ;;  %v1661_v37 = vpack.c.bf16 %v766_v4, %v751_v55  ;;  %v1631_v40 = vpack.c.bf16 %v642_v46, %v643_v44  ;;  %v716_v30 = vpack.c.bf16 %v2483_v6, %v2459_v2  ;;  %v1951_v46 = vld [vmem:[%s2711_s6 + $0x30] sm:$0xff]   ;;  %v1957_v4 = vld [vmem:[%s2712_s8 + $0x20] sm:$0xff]  }
 0x11a   :  { %v653_v25 = vsel %vm637_vm2, %v636_v18, %v2739_v58  ;;  %v753_v58 = vsel %vm750_vm0, %v746_v26, %v747_v11  ;;  %1852 = vmatmul.mubr.msk.bf16.gmra.mrb[24].mxu0 %vm1654_vm1, %v1655_v43  ;;  %v641_v17 = vsel %vm637_vm2, %v632_v29, %v633_v33  ;;  %v717_v32 = vpack.c.bf16 %v2470_v8, %v2454_v16  ;;  %v1953_v11 = vld [vmem:[%s2712_s8] sm:$0xff]   ;;  %v1955_v55 = vld [vmem:[%s2712_s8 + $0x10] sm:$0xff]  }
 0x11b   :  { %v1616_v9 = vpack.c.bf16 %v2306_v19, %v653_v25  ;;  %v1658_v63 = vpack.c.bf16 %v752_v41, %v753_v58  ;;  %v640_v19 = vsel %vm637_vm2, %v633_v33, %v634_v21  ;;  %v638_v43 = vsel %vm637_vm2, %v635_v7, %v636_v18  ;;  %v1948_v18 = vld [vmem:[%s2711_s6 + $0x18] sm:$0xff]   ;;  %v1954_v25 = vld [vmem:[%s2712_s8 + $0x8] sm:$0xff]  }
 0x11c   :  { %v639_v44 = vsel %vm637_vm2, %v634_v21, %v635_v7  ;;  %v2741_v2 = vpack.c.bf16 %v2249_v35, %v2238_v27  ;;  %v2742_v26 = vand.u32 15, %v2258_v38  ;;  %v1634_v28 = vpack.c.bf16 %v640_v19, %v641_v17  ;;  %v1952_v21 = vld [vmem:[%s2711_s6 + $0x38] sm:$0xff]  }
 0x11d   :  { %1617 = vmatmul.mubr.msk.bf16.vlgmr.msra.gmra.mrb[0].mxu1 %vm1615_vm3, %v1616_v9  ;;  %1855 = vmatprep.mubr.msk.bf16.mxu0 %vm1657_vm4, %v1658_v63  ;;  %v1637_v6 = vpack.c.bf16 %v638_v43, %v639_v44  ;;  %v2743_v29 = vand.u32 15, %v2261_v39  ;;  %v401_v16 = vadd.s32 32, %v2196_v62  ;;  %v2744_v27 = vpack.c.bf16 %v2287_v5, %v2318_v24  ;;  %v1958_v9 = vld [vmem:[%s2712_s8 + $0x28] sm:$0xff]  }
 0x11e   :  { %1062 = vmatprep.mubr.bf16.mxu1 %v2741_v2  ;;  %vm733_vm0 = vcmp.lt.s32.totalorder %v2742_v26, 15  ;;  %v2745_v35 = vpack.c.bf16 %v2334_v49, %v2309_v20  ;;  %v403_v38 = vadd.s32 48, %v2196_v62  ;;  %v2746_v7 = vpack.c.bf16 %v2381_v34, %v2387_v50 }
 0x11f   :  { %vm607_vm6 = vcmp.ge.s32.totalorder %v2743_v29, 1  ;;  %vm1660_vm7 = vmpackc.low %vm733_vm0, %vm1962_vm5  ;;  %v445_v8 = vand.u32 15, %v401_v16  ;;  %v2747_v33 = vpack.c.bf16 %v2322_v31, %v2300_v14  ;;  %v405_v5 = vadd.s32 64, %v2196_v62 }
 0x120   :  { %vm1618_vm8 = vmpackc.low %vm1962_vm5, %vm607_vm6  ;;  %v459_v39 = vand.u32 15, %v403_v38  ;;  %v2748_v24 = vpack.c.bf16 %v2417_v12, %v2430_v47  ;;  %v2749_v49 = vpack.c.bf16 %v2405_v53, %v2377_v52  ;;  %v407_v34 = vadd.s32 80, %v2196_v62  ;;  %v1945_v53 = vld [vmem:[%s2711_s6] sm:$0xff]  }
 0x121   :  { %vm609_vm2 = vcmp.ge.s32.totalorder %v445_v8, 1  ;;  %v473_v20 = vand.u32 15, %v405_v5  ;;  %v409_v31 = vadd.s32 96, %v2196_v62  ;;  %v411_v52 = vadd.s32 112, %v2196_v62  ;;  %v1946_v62 = vld [vmem:[%s2711_s6 + $0x8] sm:$0xff]  }
 0x122   :  { %1856 = vmatmul.mubr.msk.bf16.gmra.mrb[28].mxu0 %vm1660_vm7, %v1661_v37  ;;  %vm1621_vm9 = vmpackc.low %vm1962_vm5, %vm609_vm2  ;;  %vm611_vm10 = vcmp.ge.s32.totalorder %v459_v39, 1  ;;  %v487_v14 = vand.u32 15, %v407_v34  ;;  %v1963_v12 = vmov 0.0   ;;  %vm1351_vm6 = vcmask 1041409  }
 0x123   :  { %vm1624_vm11 = vmpackc.low %vm1962_vm5, %vm611_vm10  ;;  %vm613_vm12 = vcmp.ge.s32.totalorder %v473_v20, 1  ;;  %v501_v50 = vand.u32 15, %v409_v31  ;;  %v515_v47 = vand.u32 15, %v411_v52  ;;  %1859 = vmatprep.subr.bf16.mxu0 %v1963_v12  ;;  %1879 = vmatprep.subr.bf16.mxu1 %v1963_v12  ;;  %vm1353_vm7 = vcmask 1042434  }
 0x124   :  { %vm1627_vm13 = vmpackc.low %vm1962_vm5, %vm613_vm12  ;;  %vm615_vm14 = vcmp.ge.s32.totalorder %v487_v14, 1  ;;  %1860 = vmatpush3.bf16.msra.mxu0 %v1945_v53  ;;  %1880 = vmatpush3.bf16.msra.mxu1 %v1953_v11  ;;  %vm1357_vm2 = vcmask 1044484   ;;  %vm1361_vm10 = vcmask 1046534  }
 0x125   :  { %1620 = vmatmul.mubr.msk.bf16.gmra.mrb[4].mxu1 %vm1618_vm8, %v2744_v27  ;;  %vm1630_vm15 = vmpackc.low %vm1962_vm5, %vm615_vm14  ;;  %vm617_vm1 = vcmp.ge.s32.totalorder %v501_v50, 1  ;;  %vm619_vm4 = vcmp.ge.s32.totalorder %v515_v47, 1  ;;  %1861 = vmatprep.subr.bf16.mxu0 %v1963_v12  ;;  %vm1355_vm8 = vcmask 1043459  }
 0x126   :  { %1070 = vmatprep.mubr.bf16.mxu1 %v2745_v35  ;;  %vm1633_vm3 = vmpackc.low %vm1962_vm5, %vm617_vm1  ;;  %1881 = vmatprep.subr.bf16.mxu1 %v1963_v12 }
 0x127   :  { %vm1636_vm0 = vmpackc.low %vm1962_vm5, %vm619_vm4  ;;  %vm1964_vm5 = vmmov 0  }
 0x128   :  { %1862 = vmatpush3.bf16.msra.mxu0 %v1946_v62  ;;  %1875 = vmatprep.mubr.msk.bf16.mxu0 %vm1964_vm5, %v1963_v12 }
 0x129   :  { %1863 = vmatprep.subr.bf16.mxu0 %v1963_v12  ;;  %1882 = vmatpush3.bf16.msra.mxu1 %v1954_v25 }
 0x12a   :  { %1883 = vmatprep.subr.bf16.mxu1 %v1963_v12 }
 0x12d   :  { %1623 = vmatmul.mubr.msk.bf16.gmra.mrb[8].mxu1 %vm1621_vm9, %v2746_v7  ;;  %vm1359_vm9 = vcmask 1045509  }
 0x12e   :  { %1078 = vmatprep.mubr.bf16.mxu1 %v2747_v33  ;;  %1884 = vmatpush3.bf16.msra.mxu1 %v1955_v55 }
 0x12f   :  { %1885 = vmatprep.subr.bf16.mxu1 %v1963_v12 }
 0x132   :  { %1886 = vmatpush3.bf16.msra.mxu1 %v1956_v13 }
 0x133   :  { %1887 = vmatprep.subr.bf16.mxu1 %v1963_v12 }
 0x135   :  { %1626 = vmatmul.mubr.msk.bf16.gmra.mrb[12].mxu1 %vm1624_vm11, %v2748_v24  ;;  %vm1363_vm11 = vcmask 1047559  }
 0x136   :  { %1086 = vmatprep.mubr.bf16.mxu1 %v2749_v49  ;;  %1888 = vmatpush3.bf16.msra.mxu1 %v1957_v4 }
 0x137   :  { %1889 = vmatprep.subr.bf16.mxu1 %v1963_v12 }
 0x13a   :  { %1890 = vmatpush3.bf16.msra.mxu1 %v1958_v9 }
 0x13b   :  { %1891 = vmatprep.subr.bf16.mxu1 %v1963_v12 }
 0x13d   :  { %1629 = vmatmul.mubr.msk.bf16.gmra.mrb[16].mxu1 %vm1627_vm13, %v1628_v56  ;;  %v1947_v56 = vld [vmem:[%s2711_s6 + $0x10] sm:$0xff]  }
 0x13e   :  { %1094 = vmatprep.mubr.bf16.mxu1 %v715_v42  ;;  %1864 = vmatpush3.bf16.msra.mxu0 %v1947_v56  ;;  %v1950_v42 = vld [vmem:[%s2711_s6 + $0x28] sm:$0xff]  }
 0x13f   :  { %1865 = vmatprep.subr.bf16.mxu0 %v1963_v12 }
 0x142   :  { %1866 = vmatpush3.bf16.msra.mxu0 %v1948_v18 }
 0x143   :  { %1867 = vmatprep.subr.bf16.mxu0 %v1963_v12 }
 0x145   :  { %1632 = vmatmul.mubr.msk.bf16.gmra.mrb[20].mxu1 %vm1630_vm15, %v1631_v40  ;;  %v1959_v40 = vld [vmem:[%s2712_s8 + $0x30] sm:$0xff]  }
 0x146   :  { %1102 = vmatprep.mubr.bf16.mxu1 %v716_v30  ;;  %1868 = vmatpush3.bf16.msra.mxu0 %v1949_v54  ;;  %v1960_v30 = vld [vmem:[%s2712_s8 + $0x38] sm:$0xff]  }
 0x147   :  { %1869 = vmatprep.subr.bf16.mxu0 %v1963_v12  ;;  %1892 = vmatpush3.bf16.msra.mxu1 %v1959_v40 }
 0x148   :  { %1893 = vmatprep.subr.bf16.mxu1 %v1963_v12 }
 0x14a   :  { %1870 = vmatpush3.bf16.msra.mxu0 %v1950_v42 }
 0x14b   :  { %1871 = vmatprep.subr.bf16.mxu0 %v1963_v12  ;;  %1894 = vmatpush3.bf16.msra.mxu1 %v1960_v30 }
 0x14d   :  { %1635 = vmatmul.mubr.msk.bf16.gmra.mrb[24].mxu1 %vm1633_vm3, %v1634_v28  ;;  %v2641_v28 = vld [vmem:[%s2713_s5] ss:$0 sm:$0xff] }
 0x14e   :  { %1110 = vmatprep.mubr.bf16.mxu1 %v717_v32  ;;  %1872 = vmatpush3.bf16.msra.mxu0 %v1951_v46 }
 0x14f   :  { %1873 = vmatprep.subr.bf16.mxu0 %v1963_v12 }
 0x152   :  { %1874 = vmatpush3.bf16.msra.mxu0 %v1952_v21 }
 0x155   :  { %1638 = vmatmul.mubr.msk.bf16.gmra.mrb[28].mxu1 %vm1636_vm0, %v1637_v6 }
 0x156   :  { %1895 = vmatprep.mubr.msk.bf16.mxu1 %vm1964_vm5, %v1963_v12 }
 0x1dd   :  { %v1845_v41 = vpop.f32.mrb[16].mxu0 }
 0x1de   :  { %v1153_v58 = vpop.f32.mrb[17].mxu0 }
 0x1df   :  { %v1846_v37 = vpop.f32.mrb[18].mxu0 }
 0x1e0   :  { %v1156_v63 = vpop.f32.mrb[19].mxu0 }
 0x1e5   :  { %v2630_v19 = vpop.f32.mrb[20].mxu0 }
 0x1e6   :  { %v1169_v17 = vpop.f32.mrb[21].mxu0 }
 0x1e7   :  { %v2632_v32 = vpop.f32.mrb[22].mxu0 }
 0x1e8   :  { %v1172_v43 = vpop.f32.mrb[23].mxu0 }
 0x1ed   :  { %v2634_v44 = vpop.f32.mrb[24].mxu0 }
 0x1ee   :  { %v2636_v26 = vpop.f32.mrb[25].mxu0 }
 0x1ef   :  { %v2643_v29 = vpop.f32.mrb[26].mxu0 }
 0x1f0   :  { %v1713_v2 = vpop.f32.mrb[0].mxu1  ;;  %v2645_v27 = vpop.f32.mrb[27].mxu0 }
 0x1f1   :  { %v1714_v6 = vpop.f32.mrb[1].mxu1 }
 0x1f2   :  { %v1715_v16 = vadd.f32 %v1714_v6, %v1713_v2  ;;  %v1716_v8 = vpop.f32.mrb[2].mxu1 }
 0x1f3   :  { %v1717_v35 = vpop.f32.mrb[3].mxu1 }
 0x1f4   :  { %v1057_v38 = vadd.f32 %v1715_v16, %v2641_v28  ;;  %v1718_v39 = vadd.f32 %v1717_v35, %v1716_v8 }
 0x1f5   :  { %v2649_v5 = vpop.f32.mrb[28].mxu0 }
 0x1f6   :  { %v1154_v7 = vadd.f32 %v1153_v58, %v1057_v38  ;;  %v1060_v33 = vadd.f32 %v1718_v39, %v2641_v28  ;;  %v2651_v34 = vpop.f32.mrb[29].mxu0 }
 0x1f7   :  { %v2653_v31 = vpop.f32.mrb[30].mxu0 }
 0x1f8   :  { %v1216_v20 = vmax.f32 %v1154_v7, 0.0  ;;  %v1157_v24 = vadd.f32 %v1156_v63, %v1060_v33  ;;  %v1719_v49 = vpop.f32.mrb[4].mxu1  ;;  %v2655_v53 = vpop.f32.mrb[31].mxu0 }
 0x1f9   :  { %v1720_v14 = vpop.f32.mrb[5].mxu1 }
 0x1fa   :  { %v1217_v50 = vmax.f32 %v1157_v24, 0.0  ;;  %v1721_v52 = vadd.f32 %v1720_v14, %v1719_v49  ;;  %v1722_v47 = vpop.f32.mrb[6].mxu1  ;;  %v1232_v62 = vmul.f32 %v1216_v20, %v2188_v57 }
 0x1fb   :  { %v1723_v12 = vpop.f32.mrb[7].mxu1 }
 0x1fc   :  { %v1233_v56 = vmul.f32 %v1217_v50, %v2192_v60  ;;  %v1065_v18 = vadd.f32 %v1721_v52, %v2641_v28  ;;  %v1724_v54 = vadd.f32 %v1723_v12, %v1722_v47 }
 0x1fe   :  { %v1248_v42 = vmax.f32 %v1232_v62, %v1233_v56  ;;  %v1162_v46 = vadd.f32 %v1845_v41, %v1065_v18  ;;  %v1068_v21 = vadd.f32 %v1724_v54, %v2641_v28 }
 0x200   :  { %v1249_v11 = vrot.slane %v1248_v42, 4  ;;  %v1218_v25 = vmax.f32 %v1162_v46, 0.0  ;;  %v1165_v55 = vadd.f32 %v1846_v37, %v1068_v21  ;;  %v1725_v13 = vpop.f32.mrb[8].mxu1 }
 0x201   :  { %v1726_v4 = vpop.f32.mrb[9].mxu1 }
 0x202   :  { %v1250_v9 = vmax.f32 %v1248_v42, %v1249_v11  ;;  %v1219_v58 = vmax.f32 %v1165_v55, 0.0  ;;  %v1727_v63 = vadd.f32 %v1726_v4, %v1725_v13  ;;  %v1728_v40 = vpop.f32.mrb[10].mxu1  ;;  %v1234_v57 = vmul.f32 %v1218_v25, %v2194_v61 }
 0x203   :  { %v1729_v30 = vpop.f32.mrb[11].mxu1 }
 0x204   :  { %v1251_v60 = vrot.slane %v1250_v9, 2  ;;  %v1235_v2 = vmul.f32 %v1219_v58, %v2199_v0  ;;  %v1073_v6 = vadd.f32 %v1727_v63, %v2641_v28  ;;  %v1730_v41 = vadd.f32 %v1729_v30, %v1728_v40 }
 0x206   :  { %v1252_v16 = vmax.f32 %v1250_v9, %v1251_v60  ;;  %v1255_v8 = vmax.f32 %v1234_v57, %v1235_v2  ;;  %v1170_v35 = vadd.f32 %v1169_v17, %v1073_v6  ;;  %v1076_v37 = vadd.f32 %v1730_v41, %v2641_v28 }
 0x208   :  { %v1256_v38 = vrot.slane %v1255_v8, 4  ;;  %v1220_v39 = vmax.f32 %v1170_v35, 0.0  ;;  %v1173_v7 = vadd.f32 %v1172_v43, %v1076_v37  ;;  %v1731_v33 = vpop.f32.mrb[12].mxu1  ;;  %v1253_v20 = vrot.slane %v1252_v16, 1 }
 0x209   :  { %v1732_v24 = vpop.f32.mrb[13].mxu1 }
 0x20a   :  { %v1257_v49 = vmax.f32 %v1255_v8, %v1256_v38  ;;  %v1221_v61 = vmax.f32 %v1173_v7, 0.0  ;;  %v1734_v14 = vpop.f32.mrb[14].mxu1  ;;  %v1733_v50 = vadd.f32 %v1732_v24, %v1731_v33  ;;  %v1236_v47 = vmul.f32 %v1220_v39, %v2201_v1 }
 0x20b   :  { %v1735_v52 = vpop.f32.mrb[15].mxu1  ;;  %v1254_v17 = vmax.f32 %v1252_v16, %v1253_v20 }
 0x20c   :  { %v1258_v0 = vrot.slane %v1257_v49, 2  ;;  %v1237_v12 = vmul.f32 %v1221_v61, %v2215_v10  ;;  %v1736_v62 = vadd.f32 %v1735_v52, %v1734_v14  ;;  %v1081_v56 = vadd.f32 %v1733_v50, %v2641_v28 }
 0x20d   :  { %v1304_v55 = vpack.c.bf16 %v1254_v17, %v1254_v17 }
 0x20e   :  { %v1259_v18 = vmax.f32 %v1257_v49, %v1258_v0  ;;  %v1262_v54 = vmax.f32 %v1236_v47, %v1237_v12  ;;  %v1084_v43 = vadd.f32 %v1736_v62, %v2641_v28  ;;  %v1178_v42 = vadd.f32 %v2630_v19, %v1081_v56 }
 0x20f   :  { %v1343_v6 = vunpack.c.l.b16 %v1304_v55 }
 0x210   :  { %v1260_v46 = vrot.slane %v1259_v18, 1  ;;  %v1263_v21 = vrot.slane %v1262_v54, 4  ;;  %v1181_v11 = vadd.f32 %v2632_v32, %v1084_v43  ;;  %v1737_v25 = vpop.f32.mrb[16].mxu1  ;;  %v1222_v13 = vmax.f32 %v1178_v42, 0.0 }
 0x211   :  { %v1738_v1 = vpop.f32.mrb[17].mxu1 }
 0x212   :  { %v1261_v4 = vmax.f32 %v1259_v18, %v1260_v46  ;;  %v1264_v10 = vmax.f32 %v1262_v54, %v1263_v21  ;;  %v1223_v9 = vmax.f32 %v1181_v11, 0.0  ;;  %v1739_v58 = vadd.f32 %v1738_v1, %v1737_v25  ;;  %v1740_v63 = vpop.f32.mrb[18].mxu1 }
 0x213   :  { %v1238_v40 = vmul.f32 %v1222_v13, %v2224_v15  ;;  %v1741_v57 = vpop.f32.mrb[19].mxu1 }
 0x214   :  { %v1305_v30 = vpack.c.bf16 %v1261_v4, %v1261_v4  ;;  %v1265_v60 = vrot.slane %v1264_v10, 2  ;;  %v1239_v19 = vmul.f32 %v1223_v9, %v2251_v36  ;;  %v1089_v2 = vadd.f32 %v1739_v58, %v2641_v28 }
 0x215   :  { %v1742_v32 = vadd.f32 %v1741_v57, %v1740_v63 }
 0x216   :  { %v1344_v41 = vunpack.c.l.b16 %v1305_v30  ;;  %v1266_v16 = vmax.f32 %v1264_v10, %v1265_v60  ;;  %v1269_v8 = vmax.f32 %v1238_v40, %v1239_v19  ;;  %v1186_v35 = vadd.f32 %v2636_v26, %v1089_v2 }
 0x217   :  { %v1092_v37 = vadd.f32 %v1742_v32, %v2641_v28 }
 0x218   :  { %v1352_v38 = vsel %vm1351_vm6, %v1344_v41, %v1343_v6  ;;  %v1267_v39 = vrot.slane %v1266_v16, 1  ;;  %v1270_v15 = vrot.slane %v1269_v8, 4  ;;  %v1743_v7 = vpop.f32.mrb[20].mxu1  ;;  %v1224_v33 = vmax.f32 %v1186_v35, 0.0 }
 0x219   :  { %v1189_v20 = vadd.f32 %v2645_v27, %v1092_v37  ;;  %v1744_v36 = vpop.f32.mrb[21].mxu1 }
 0x21a   :  { %v1268_v24 = vmax.f32 %v1266_v16, %v1267_v39  ;;  %v1271_v49 = vmax.f32 %v1269_v8, %v1270_v15  ;;  %v1745_v61 = vadd.f32 %v1744_v36, %v1743_v7  ;;  %v1746_v14 = vpop.f32.mrb[22].mxu1  ;;  %v1240_v62 = vmul.f32 %v1224_v33, %v2267_v45 }
 0x21b   :  { %v1225_v50 = vmax.f32 %v1189_v20, 0.0  ;;  %v1747_v52 = vpop.f32.mrb[23].mxu1 }
 0x21c   :  { %v1306_v0 = vpack.c.bf16 %v1268_v24, %v1268_v24  ;;  %v1272_v47 = vrot.slane %v1271_v49, 2  ;;  %v1097_v26 = vadd.f32 %v1745_v61, %v2641_v28  ;;  %v1748_v12 = vadd.f32 %v1747_v52, %v1746_v14 }
 0x21d   :  { %v1241_v17 = vmul.f32 %v1225_v50, %v2311_v22 }
 0x21e   :  { %v1345_v56 = vunpack.c.l.b16 %v1306_v0  ;;  %v1273_v18 = vmax.f32 %v1271_v49, %v1272_v47  ;;  %v1194_v27 = vadd.f32 %v2634_v44, %v1097_v26  ;;  %v1100_v54 = vadd.f32 %v1748_v12, %v2641_v28 }
 0x21f   :  { %v1276_v43 = vmax.f32 %v1240_v62, %v1241_v17 }
 0x220   :  { %v1354_v42 = vsel %vm1353_vm7, %v1345_v56, %v1352_v38  ;;  %v1274_v46 = vrot.slane %v1273_v18, 1  ;;  %v1226_v21 = vmax.f32 %v1194_v27, 0.0  ;;  %v1197_v11 = vadd.f32 %v2643_v29, %v1100_v54  ;;  %v1749_v25 = vpop.f32.mrb[24].mxu1 }
 0x221   :  { %v1277_v55 = vrot.slane %v1276_v43, 4  ;;  %v1750_v13 = vpop.f32.mrb[25].mxu1 }
 0x222   :  { %v1275_v1 = vmax.f32 %v1273_v18, %v1274_v46  ;;  %v1227_v4 = vmax.f32 %v1197_v11, 0.0  ;;  %v1751_v45 = vadd.f32 %v1750_v13, %v1749_v25  ;;  %v1752_v10 = vpop.f32.mrb[26].mxu1  ;;  %v1242_v9 = vmul.f32 %v1226_v21, %v2313_v23 }
 0x223   :  { %v1278_v22 = vmax.f32 %v1276_v43, %v1277_v55  ;;  %v1753_v58 = vpop.f32.mrb[27].mxu1  ;;  %v2750_v43 = vld [vmem:[#allocation2_spill] sm:$0xff] }
 0x224   :  { %v1307_v44 = vpack.c.bf16 %v1275_v1, %v1275_v1  ;;  %v1243_v63 = vmul.f32 %v1227_v4, %v2360_v3  ;;  %v1105_v40 = vadd.f32 %v1751_v45, %v2641_v28  ;;  %v1754_v57 = vadd.f32 %v1753_v58, %v1752_v10 }
 0x225   :  { %v1279_v30 = vrot.slane %v1278_v22, 2 }
 0x226   :  { %v1346_v29 = vunpack.c.l.b16 %v1307_v44  ;;  %v1283_v60 = vmax.f32 %v1242_v9, %v1243_v63  ;;  %v1202_v19 = vadd.f32 %v2651_v34, %v1105_v40  ;;  %v1108_v2 = vadd.f32 %v1754_v57, %v2641_v28  ;;  %v1663_v40 = vld [vmem:[%s2714_s7] ss:$0 sm:$0xff] }
 0x227   :  { %v1280_v6 = vmax.f32 %v1278_v22, %v1279_v30 }
 0x228   :  { %v1356_v32 = vsel %vm1355_vm8, %v1346_v29, %v1354_v42  ;;  %v1284_v41 = vrot.slane %v1283_v60, 4  ;;  %v1228_v16 = vmax.f32 %v1202_v19, 0.0  ;;  %v1205_v23 = vadd.f32 %v2655_v53, %v1108_v2  ;;  %v1755_v8 = vpop.f32.mrb[28].mxu1 }
 0x229   :  { %v1281_v35 = vrot.slane %v1280_v6, 1  ;;  %v1756_v3 = vpop.f32.mrb[29].mxu1 }
 0x22a   :  { %v1285_v37 = vmax.f32 %v1283_v60, %v1284_v41  ;;  %v1229_v38 = vmax.f32 %v1205_v23, 0.0  ;;  %v1757_v39 = vadd.f32 %v1756_v3, %v1755_v8  ;;  %v1758_v15 = vpop.f32.mrb[30].mxu1  ;;  %v1244_v33 = vmul.f32 %v1228_v16, %v2369_v59 }
 0x22b   :  { %v1282_v7 = vmax.f32 %v1280_v6, %v1281_v35  ;;  %v1759_v20 = vpop.f32.mrb[31].mxu1 }
 0x22c   :  { %v1286_v34 = vrot.slane %v1285_v37, 2  ;;  %v1245_v36 = vmul.f32 %v1229_v38, %v2467_v48  ;;  %v1113_v24 = vadd.f32 %v1757_v39, %v2641_v28  ;;  %v1760_v49 = vadd.f32 %v1759_v20, %v1758_v15 }
 0x22d   :  { %v1308_v61 = vpack.c.bf16 %v1282_v7, %v1282_v7 }
 0x22e   :  { %v1287_v53 = vmax.f32 %v1285_v37, %v1286_v34  ;;  %v1290_v14 = vmax.f32 %v1244_v33, %v1245_v36  ;;  %v1210_v50 = vadd.f32 %v2649_v5, %v1113_v24  ;;  %v1116_v52 = vadd.f32 %v1760_v49, %v2641_v28 }
 0x22f   :  { %v1347_v0 = vunpack.c.l.b16 %v1308_v61 }
 0x230   :  { %v1288_v47 = vrot.slane %v1287_v53, 1  ;;  %v1291_v26 = vrot.slane %v1290_v14, 4  ;;  %v1230_v12 = vmax.f32 %v1210_v50, 0.0  ;;  %v1213_v59 = vadd.f32 %v2653_v31, %v1116_v52 }
 0x231   :  { %v1358_v62 = vsel %vm1357_vm2, %v1347_v0, %v1356_v32  ;;  %v1672_v32 = vld [vmem:[%s2715_s9] ss:$0 sm:$0xff] }
 0x232   :  { %v1289_v17 = vmax.f32 %v1287_v53, %v1288_v47  ;;  %v1292_v48 = vmax.f32 %v1290_v14, %v1291_v26  ;;  %v1231_v56 = vmax.f32 %v1213_v59, 0.0  ;;  %v1246_v54 = vmul.f32 %v1230_v12, %v2435_v51 }
 0x234   :  { %v1309_v18 = vpack.c.bf16 %v1289_v17, %v1289_v17  ;;  %v1293_v27 = vrot.slane %v1292_v48, 2  ;;  %v1247_v42 = vmul.f32 %v1231_v56, %v2750_v43 }
 0x236   :  { %v1348_v5 = vunpack.c.l.b16 %v1309_v18  ;;  %v1294_v46 = vmax.f32 %v1292_v48, %v1293_v27  ;;  %v1297_v28 = vmax.f32 %v1246_v54, %v1247_v42 }
 0x238   :  { %v1295_v21 = vrot.slane %v1294_v46, 1  ;;  %v1298_v11 = vrot.slane %v1297_v28, 4  ;;  %v1360_v25 = vsel %vm1359_vm9, %v1348_v5, %v1358_v62 }
 0x23a   :  { %v1296_v55 = vmax.f32 %v1294_v46, %v1295_v21  ;;  %v1299_v13 = vmax.f32 %v1297_v28, %v1298_v11 }
 0x23c   :  { %v1310_v31 = vpack.c.bf16 %v1296_v55, %v1296_v55  ;;  %v1300_v1 = vrot.slane %v1299_v13, 2 }
 0x23e   :  { %v1349_v4 = vunpack.c.l.b16 %v1310_v31  ;;  %v1301_v45 = vmax.f32 %v1299_v13, %v1300_v1 }
 0x240   :  { %v1302_v10 = vrot.slane %v1301_v45, 1  ;;  %v1362_v22 = vsel %vm1361_vm10, %v1349_v4, %v1360_v25 }
 0x242   :  { %v1303_v9 = vmax.f32 %v1301_v45, %v1302_v10 }
 0x244   :  { %v1311_v51 = vpack.c.bf16 %v1303_v9, %v1303_v9 }
 0x246   :  { %v1350_v58 = vunpack.c.l.b16 %v1311_v51 }
 0x248   :  { %v1364_v44 = vsel %vm1363_vm11, %v1350_v58, %v1362_v22 }
 0x249   :  { %v1365_v63 = vpack.c.b16 %v1364_v44, %v1364_v44 }
 0x24b   :  { %1876 = vmatmul.mubr.bf16.vlgmr.msra.gmra.mrb[32].mxu0 %v1365_v63 }
 0x31e   :  { %v1449_v57 = vpop.f32.mrb[32].mxu0 }
 0x31f   :  { %v1450_v30 = vadd.f32 %v1663_v40, %v1449_v57  ;;  %v1877_v29 = vpop.f32.mrb[33].mxu0 }
 0x320   :  { %v1452_v60 = vpop.f32.mrb[34].mxu0 }
 0x321   :  { %v1455_v19 = vmax.f32 %v1450_v30, 0.0  ;;  %v1878_v2 = vpop.f32.mrb[35].mxu0 }
 0x323   :  { %v1456_v6 = vpack.c.bf16 %v1455_v19, %v1455_v19 }
 0x325   :  { %1896 = vmatmul.mubr.bf16.vlgmr.msra.gmra.mrb[32].mxu1 %v1456_v6 }
 0x3f8   :  { %v1562_v41 = vpop.f32.mrb[32].mxu1 }
 0x3f9   :  { %v1563_v16 = vadd.f32 %v1672_v32, %v1562_v41  ;;  %v1897_v23 = vpop.f32.mrb[33].mxu1 }
 0x3fa   :  { %v1565_v8 = vpop.f32.mrb[34].mxu1 }
 0x3fb   :  { %1568 = vst [vmem:[%s2716_s10] sm:$0xff] %v1563_v16  ;;  %v1898_v35 = vpop.f32.mrb[35].mxu1 }

</bundles_post_ra>
